<compile_context>
chip_gen: v5e
topology: v5e:2x2
jax: 0.10.0
libtpu: 0.0.40
codegen_flags: <defaults>
</compile_context>

<pallas_src>
import jax
import jax.numpy as jnp
from jax.experimental import pallas as pl
from jax.experimental.pallas import tpu as pltpu


def _round_up(n, m):
    return (n + m - 1) // m * m


def _cdiv(a, b):
    return -(-a // b)


def _elu(x):
    # ELU(alpha=1): for x > 0 the max picks x, for x <= 0 it picks exp(x) - 1
    # (which is > x there).  Saves the compare+where pair of the naive form.
    return jnp.maximum(x, jnp.exp(jnp.minimum(x, 0.0)) - 1.0)


def _device_kind():
    try:
        return jax.devices()[0].device_kind.lower()
    except Exception:
        return ""


def _elementwise_dtype():
    kind = _device_kind()
    # bf16 VPU/EUP is native on v6e / v7x; keep f32 elementwise on v5e and older.
    if ("v6" in kind) or ("v7" in kind) or ("7x" in kind):
        return jnp.bfloat16
    return jnp.float32


def _is_dual_tensorcore():
    kind = _device_kind()
    return ("v7" in kind) or ("7x" in kind)


def make_mine_kernel(in_dim, h_active, compute_dtype):
    cdt = compute_dtype

    def kernel(x_ref, w1_ref, b1_ref, w2_ref, b2_ref, w3_ref, b3_ref, o_ref):
        x = x_ref[...].astype(cdt)                    # (in_dim, tb) feature-major
        w1 = w1_ref[...].astype(cdt)                  # (Hp, in_dim)
        b1 = b1_ref[...].astype(cdt)                  # (Hp, 1)

        # --- fc1 on the VPU: K = in_dim (2) is far too small to feed the MXU. ---
        acc = w1[:, 0:1] * x[0:1, :]                  # (Hp, tb) broadcast FMA
        for k in range(1, in_dim):                    # static unroll, in_dim tiny
            acc = acc + w1[:, k:k + 1] * x[k:k + 1, :]
        h1 = _elu(acc + b1)                           # (Hp, tb); padded rows stay 0

        # --- fc2 on the MXU: bf16 operands, f32 accumulate, lane-dense N = tb. ---
        h2_pre = jnp.dot(
            w2_ref[...], h1.astype(jnp.bfloat16),
            preferred_element_type=jnp.float32,
        )                                             # (Hp, tb) f32

        # --- post-fc2 elementwise + fc3 only on the real hidden rows. ---
        ha = h_active
        b2 = b2_ref[...][:ha, :].astype(cdt)
        h2 = _elu(h2_pre[:ha, :].astype(cdt) + b2)    # (Ha, tb)

        # fc3: VPU multiply (promoted to f32) + cross-sublane reduce -> (1, tb).
        prod = w3_ref[...][:ha, :] * h2               # f32 * cdt -> f32
        o_ref[...] = jnp.sum(prod, axis=0, keepdims=True) + b3_ref[...]

    return kernel


def init_params(key, input_size=2, hidden_size=100):
    """PyTorch-layout params: weights (out, in), normal(std=0.02), zero bias."""
    k1, k2, k3 = jax.random.split(key, 3)
    return {
        "w1": 0.02 * jax.random.normal(k1, (hidden_size, input_size), jnp.float32),
        "b1": jnp.zeros((hidden_size,), jnp.float32),
        "w2": 0.02 * jax.random.normal(k2, (hidden_size, hidden_size), jnp.float32),
        "b2": jnp.zeros((hidden_size,), jnp.float32),
        "w3": 0.02 * jax.random.normal(k3, (1, hidden_size), jnp.float32),
        "b3": jnp.zeros((1,), jnp.float32),
    }


def pad_params(p):
    """Zero-pad the hidden dim up to a multiple of 128, store biases as column
    vectors and w3 as a column.  w2 is stored in bf16 (MXU operand); padded
    rows/cols are exactly zero, and ELU(0) = 0, so padded channels stay inert."""
    H, in_dim = p["w1"].shape
    Hp = _round_up(H, 128)
    w1 = jnp.zeros((Hp, in_dim), jnp.float32).at[:H, :].set(p["w1"])
    b1 = jnp.zeros((Hp, 1), jnp.float32).at[:H, 0].set(p["b1"])
    w2 = jnp.zeros((Hp, Hp), jnp.float32).at[:H, :H].set(p["w2"]).astype(jnp.bfloat16)
    b2 = jnp.zeros((Hp, 1), jnp.float32).at[:H, 0].set(p["b2"])
    w3 = jnp.zeros((Hp, 1), jnp.float32).at[:H, 0].set(p["w3"][0])
    b3 = p["b3"].reshape(1, 1).astype(jnp.float32)
    return {"w1": w1, "b1": b1, "w2": w2, "b2": b2, "w3": w3, "b3": b3}


def mine_forward(x, padded_params, *, hidden_size=100, tile_b_max=4096):
    """Fused forward pass of the Mine MLP.

    x: (B, input_size) float32
    padded_params: output of pad_params (hidden dim padded to a multiple of 128)
    """
    w1, b1, w2, b2, w3, b3 = (
        padded_params[k] for k in ("w1", "b1", "w2", "b2", "w3", "b3")
    )
    B, in_dim = x.shape
    Hp = w1.shape[0]
    assert w1.shape == (Hp, in_dim)
    h_active = min(Hp, _round_up(hidden_size, 8))
    cdt = _elementwise_dtype()

    # Even, lane-dense batch tiling: round B up to 128 first, then split into
    # equal 128-multiple tiles.  On dual-TC parts force >= 2 (even) tiles.
    Bp0 = _round_up(B, 128)
    tile_cap = max(128, _round_up(min(int(tile_b_max), Bp0), 128))
    n_tiles = _cdiv(Bp0, tile_cap)
    if _is_dual_tensorcore() and Bp0 >= 256:
        n_tiles = max(n_tiles, 2)
        if n_tiles % 2:
            n_tiles += 1
    tile_b = _round_up(_cdiv(Bp0, n_tiles), 128)
    Bp = tile_b * n_tiles

    # Feature-major input (in_dim, Bp); batch tail zero-padded (sliced off later).
    # TODO(synk): produce x feature-major upstream to avoid this transpose+pad.
    x_t = jnp.zeros((in_dim, Bp), cdt).at[:, :B].set(x.T.astype(cdt))

    full = lambda shape: pl.BlockSpec(shape, lambda i: (0, 0))
    cost = pl.CostEstimate(
        flops=2 * Bp * (Hp * in_dim + Hp * Hp + h_active),
        transcendentals=Bp * (Hp + h_active),
        bytes_accessed=(
            x_t.size * x_t.dtype.itemsize
            + Bp * 4
            + w2.size * w2.dtype.itemsize
            + (w1.size + b1.size + b2.size + w3.size + 1) * 4
        ),
    )

    out_t = pl.pallas_call(
        make_mine_kernel(in_dim, h_active, cdt),
        out_shape=jax.ShapeDtypeStruct((1, Bp), jnp.float32),
        grid_spec=pltpu.PrefetchScalarGridSpec(
            num_scalar_prefetch=0,
            grid=(n_tiles,),
            in_specs=[
                pl.BlockSpec((in_dim, tile_b), lambda i: (0, i)),  # x tiled on batch
                full((Hp, in_dim)),   # w1 (resident)
                full((Hp, 1)),        # b1
                full((Hp, Hp)),       # w2 (bf16, resident)
                full((Hp, 1)),        # b2
                full((Hp, 1)),        # w3 (column)
                full((1, 1)),         # b3
            ],
            out_specs=pl.BlockSpec((1, tile_b), lambda i: (0, i)),
        ),
        compiler_params=pltpu.CompilerParams(
            dimension_semantics=("parallel",),
        ),
        cost_estimate=cost,
    )(x_t, w1, b1, w2, b2, w3, b3)

    return out_t[:, :B].T     # (B, 1) float32


def mine_reference(x, p):
    """Pure-JAX f32 reference using the unpadded PyTorch-layout params."""
    elu = lambda v: jnp.where(v > 0, v, jnp.expm1(jnp.minimum(v, 0.0)))
    h1 = elu(x @ p["w1"].T + p["b1"])
    h2 = elu(h1 @ p["w2"].T + p["b2"])
    return h2 @ p["w3"].T + p["b3"]


if __name__ == "__main__":
    key = jax.random.PRNGKey(0)
    kp, kx = jax.random.split(key)

    input_size, hidden_size, batch = 2, 100, 8
    params = init_params(kp, input_size, hidden_size)
    x = jax.random.normal(kx, (batch, input_size), jnp.float32)

    padded = pad_params(params)
    out = mine_forward(x, padded, hidden_size=hidden_size)
    out = jax.block_until_ready(out)

    ref = mine_reference(x, params)
    assert out.shape == (batch, 1), out.shape
    # Kernel uses bf16 MXU operands (and bf16 elementwise on v6e/v7x); compare
    # against the pure-f32 reference with a correspondingly loosened tolerance.
    max_err = float(jnp.max(jnp.abs(out - ref)))
    assert jnp.allclose(out, ref, atol=1e-3, rtol=2e-2), max_err

    print("KERNEL_OK")
</pallas_src>

<mosaic_0001>
module attributes {stable_mosaic.version = 11 : i64} {
  func.func @kernel(%arg0: i32, %arg1: memref<2x128xf32, #tpu.memory_space<vmem>>, %arg2: memref<128x2xf32, #tpu.memory_space<vmem>>, %arg3: memref<128x1xf32, #tpu.memory_space<vmem>>, %arg4: memref<128x128xbf16, #tpu.memory_space<vmem>>, %arg5: memref<128x1xf32, #tpu.memory_space<vmem>>, %arg6: memref<128x1xf32, #tpu.memory_space<vmem>>, %arg7: memref<1x1xf32, #tpu.memory_space<vmem>>, %arg8: memref<1x128xf32, #tpu.memory_space<vmem>>) attributes {dimension_semantics = [#tpu.dimension_semantics<parallel>], iteration_bounds = array<i64: 1>, scalar_prefetch = 0 : i64, scratch_operands = 0 : i64, tpu.core_type = #tpu.core_type<tc>, window_params = [{transform_indices = @transform_0, window_bounds = array<i64: 2, 128>}, {pipeline_mode = #tpu.pipeline_mode<synchronous>, transform_indices = @transform_1, window_bounds = array<i64: 128, 2>}, {pipeline_mode = #tpu.pipeline_mode<synchronous>, transform_indices = @transform_2, window_bounds = array<i64: 128, 1>}, {pipeline_mode = #tpu.pipeline_mode<synchronous>, transform_indices = @transform_3, window_bounds = array<i64: 128, 128>}, {pipeline_mode = #tpu.pipeline_mode<synchronous>, transform_indices = @transform_4, window_bounds = array<i64: 128, 1>}, {pipeline_mode = #tpu.pipeline_mode<synchronous>, transform_indices = @transform_5, window_bounds = array<i64: 128, 1>}, {pipeline_mode = #tpu.pipeline_mode<synchronous>, transform_indices = @transform_6, window_bounds = array<i64: 1, 1>}, {transform_indices = @transform_7, window_bounds = array<i64: 1, 128>}]} {
    %c0 = arith.constant 0 : index
    %c0_0 = arith.constant 0 : index
    %0 = vector.load %arg1[%c0, %c0_0] : memref<2x128xf32, #tpu.memory_space<vmem>>, vector<2x128xf32>
    %c0_1 = arith.constant 0 : index
    %c0_2 = arith.constant 0 : index
    %1 = vector.load %arg2[%c0_1, %c0_2] : memref<128x2xf32, #tpu.memory_space<vmem>>, vector<128x2xf32>
    %c0_3 = arith.constant 0 : index
    %c0_4 = arith.constant 0 : index
    %2 = vector.load %arg3[%c0_3, %c0_4] : memref<128x1xf32, #tpu.memory_space<vmem>>, vector<128x1xf32>
    %3 = vector.extract_strided_slice %1 {offsets = [0, 0], sizes = [128, 1], strides = [1, 1]} : vector<128x2xf32> to vector<128x1xf32>
    %4 = vector.extract_strided_slice %0 {offsets = [0, 0], sizes = [1, 128], strides = [1, 1]} : vector<2x128xf32> to vector<1x128xf32>
    %5 = vector.broadcast %3 : vector<128x1xf32> to vector<128x128xf32>
    %6 = vector.broadcast %4 : vector<1x128xf32> to vector<128x128xf32>
    %7 = arith.mulf %5, %6 : vector<128x128xf32>
    %8 = vector.extract_strided_slice %1 {offsets = [0, 1], sizes = [128, 1], strides = [1, 1]} : vector<128x2xf32> to vector<128x1xf32>
    %9 = vector.extract_strided_slice %0 {offsets = [1, 0], sizes = [1, 128], strides = [1, 1]} : vector<2x128xf32> to vector<1x128xf32>
    %10 = vector.broadcast %8 : vector<128x1xf32> to vector<128x128xf32>
    %11 = vector.broadcast %9 : vector<1x128xf32> to vector<128x128xf32>
    %12 = arith.mulf %10, %11 : vector<128x128xf32>
    %13 = arith.addf %7, %12 : vector<128x128xf32>
    %14 = vector.broadcast %2 : vector<128x1xf32> to vector<128x128xf32>
    %15 = arith.addf %13, %14 : vector<128x128xf32>
    %cst = arith.constant 0.000000e+00 : f32
    %16 = vector.broadcast %cst : f32 to vector<128x128xf32>
    %17 = arith.minimumf %15, %16 : vector<128x128xf32>
    %18 = math.exp %17 : vector<128x128xf32>
    %cst_5 = arith.constant 1.000000e+00 : f32
    %19 = vector.broadcast %cst_5 : f32 to vector<128x128xf32>
    %20 = arith.subf %18, %19 : vector<128x128xf32>
    %21 = arith.maximumf %15, %20 : vector<128x128xf32>
    %c0_6 = arith.constant 0 : index
    %c0_7 = arith.constant 0 : index
    %22 = vector.load %arg4[%c0_6, %c0_7] : memref<128x128xbf16, #tpu.memory_space<vmem>>, vector<128x128xbf16>
    %23 = arith.truncf %21 : vector<128x128xf32> to vector<128x128xbf16>
    %cst_8 = arith.constant dense<0.000000e+00> : vector<128x128xf32>
    %24 = tpu.matmul %22, %23, %cst_8 {dimension_numbers = #tpu.dot_dimension_numbers<[1], [0], [0], [1], [0, 0, 1, 1], [], []>} : vector<128x128xbf16>, vector<128x128xbf16>, vector<128x128xf32> -> vector<128x128xf32>
    %c0_9 = arith.constant 0 : index
    %c0_10 = arith.constant 0 : index
    %25 = vector.load %arg5[%c0_9, %c0_10] : memref<128x1xf32, #tpu.memory_space<vmem>>, vector<128x1xf32>
    %26 = vector.extract_strided_slice %25 {offsets = [0, 0], sizes = [104, 1], strides = [1, 1]} : vector<128x1xf32> to vector<104x1xf32>
    %27 = vector.extract_strided_slice %24 {offsets = [0, 0], sizes = [104, 128], strides = [1, 1]} : vector<128x128xf32> to vector<104x128xf32>
    %28 = vector.broadcast %26 : vector<104x1xf32> to vector<104x128xf32>
    %29 = arith.addf %27, %28 : vector<104x128xf32>
    %cst_11 = arith.constant 0.000000e+00 : f32
    %30 = vector.broadcast %cst_11 : f32 to vector<104x128xf32>
    %31 = arith.minimumf %29, %30 : vector<104x128xf32>
    %32 = math.exp %31 : vector<104x128xf32>
    %cst_12 = arith.constant 1.000000e+00 : f32
    %33 = vector.broadcast %cst_12 : f32 to vector<104x128xf32>
    %34 = arith.subf %32, %33 : vector<104x128xf32>
    %35 = arith.maximumf %29, %34 : vector<104x128xf32>
    %c0_13 = arith.constant 0 : index
    %c0_14 = arith.constant 0 : index
    %36 = vector.load %arg6[%c0_13, %c0_14] : memref<128x1xf32, #tpu.memory_space<vmem>>, vector<128x1xf32>
    %37 = vector.extract_strided_slice %36 {offsets = [0, 0], sizes = [104, 1], strides = [1, 1]} : vector<128x1xf32> to vector<104x1xf32>
    %38 = vector.broadcast %37 : vector<104x1xf32> to vector<104x128xf32>
    %39 = arith.mulf %38, %35 : vector<104x128xf32>
    %cst_15 = arith.constant dense<0.000000e+00> : vector<128xf32>
    %40 = vector.multi_reduction <add>, %39, %cst_15 [0] : vector<104x128xf32> to vector<128xf32>
    %41 = vector.shape_cast %40 : vector<128xf32> to vector<1x128xf32>
    %c0_16 = arith.constant 0 : index
    %c0_17 = arith.constant 0 : index
    %42 = vector.load %arg7[%c0_16, %c0_17] : memref<1x1xf32, #tpu.memory_space<vmem>>, vector<1x1xf32>
    %43 = vector.broadcast %42 : vector<1x1xf32> to vector<1x128xf32>
    %44 = arith.addf %41, %43 : vector<1x128xf32>
    %c0_18 = arith.constant 0 : index
    %c0_19 = arith.constant 0 : index
    %45 = vector.load %arg8[%c0_18, %c0_19] : memref<1x128xf32, #tpu.memory_space<vmem>>, vector<1x128xf32>
    tpu.vector_store %arg8[%c0_18, %c0_19], %44 {strides = array<i32>} : memref<1x128xf32, #tpu.memory_space<vmem>>, vector<1x128xf32>,
    return
  }
  func.func @transform_0(%arg0: i32) -> (i32, i32) {
    %c0_i32 = arith.constant 0 : i32
    %c0_i32_0 = arith.constant 0 : i32
    return %c0_i32, %arg0 : i32, i32
  }
  func.func @transform_1(%arg0: i32) -> (i32, i32) {
    %c0_i32 = arith.constant 0 : i32
    %c0_i32_0 = arith.constant 0 : i32
    %c0_i32_1 = arith.constant 0 : i32
    return %c0_i32, %c0_i32_0 : i32, i32
  }
  func.func @transform_2(%arg0: i32) -> (i32, i32) {
    %c0_i32 = arith.constant 0 : i32
    %c0_i32_0 = arith.constant 0 : i32
    %c0_i32_1 = arith.constant 0 : i32
    return %c0_i32, %c0_i32_0 : i32, i32
  }
  func.func @transform_3(%arg0: i32) -> (i32, i32) {
    %c0_i32 = arith.constant 0 : i32
    %c0_i32_0 = arith.constant 0 : i32
    %c0_i32_1 = arith.constant 0 : i32
    return %c0_i32, %c0_i32_0 : i32, i32
  }
  func.func @transform_4(%arg0: i32) -> (i32, i32) {
    %c0_i32 = arith.constant 0 : i32
    %c0_i32_0 = arith.constant 0 : i32
    %c0_i32_1 = arith.constant 0 : i32
    return %c0_i32, %c0_i32_0 : i32, i32
  }
  func.func @transform_5(%arg0: i32) -> (i32, i32) {
    %c0_i32 = arith.constant 0 : i32
    %c0_i32_0 = arith.constant 0 : i32
    %c0_i32_1 = arith.constant 0 : i32
    return %c0_i32, %c0_i32_0 : i32, i32
  }
  func.func @transform_6(%arg0: i32) -> (i32, i32) {
    %c0_i32 = arith.constant 0 : i32
    %c0_i32_0 = arith.constant 0 : i32
    %c0_i32_1 = arith.constant 0 : i32
    return %c0_i32, %c0_i32_0 : i32, i32
  }
  func.func @transform_7(%arg0: i32) -> (i32, i32) {
    %c0_i32 = arith.constant 0 : i32
    %c0_i32_0 = arith.constant 0 : i32
    return %c0_i32, %arg0 : i32, i32
  }
}

</mosaic_0001>

<bundles_post_ra>
// kernel: tpu_custom_call.1
= control target key start
LH: loop header
LB: loop body
LE: loop exit
PB: predicated region body
PF: predicated region fallthrough
CT: control target
= control target key end

     0   :  { %s1465_s0 = inlined_call_operand.vmem [shape: f32[2,128], index: 0, kind: input, shape index: {}]   ;;  %s1466_s1 = inlined_call_operand.vmem [shape: f32[128,2], index: 1, kind: input, shape index: {}]   ;;  %s1467_s2 = inlined_call_operand.vmem [shape: f32[128,1], index: 2, kind: input, shape index: {}]   ;;  %s1468_s3 = inlined_call_operand.vmem [shape: bf16[128,128], index: 3, kind: input, shape index: {}]   ;;  %s1469_s4 = inlined_call_operand.vmem [shape: f32[128,1], index: 4, kind: input, shape index: {}]   ;;  %s1470_s5 = inlined_call_operand.vmem [shape: f32[128,1], index: 5, kind: input, shape index: {}]   ;;  %s1471_s6 = inlined_call_operand.<no memory space> [shape: f32[1,1], index: 6, kind: input, shape index: {}]   ;;  %s1472_s7 = inlined_call_operand.hbm [shape: f32[1,128], index: 7, kind: output, shape index: {}]  }
   0x1   :  { %v12_v0 = vstv %s1471_s6 }
   0x2   :  { %13 = vst [vmem:[#allocation2] sm:$0x1] %v12_v0 }
   0x3   :  { %v34_v1 = vld [vmem:[%s1466_s1 + $0x20] sm:$0xff]  ;;  %v32_v2 = vld [vmem:[%s1466_s1 + $0x10] sm:$0xff]  ;;  %v1030_v3 = vmov 1   ;;  %v1031_v4 = vmov 0  }
   0x4   :  { %940 = vset.pattern.permute.xlu0 %v1030_v3  ;;  %937 = vset.pattern.permute.xlu2 %v1031_v4 }
   0x5   :  { %936 = vset.pattern.permute.xlu1 %v1031_v4  ;;  %84 = vperm.xlu2 %937, %v34_v1  }
   0x6   :  { %168 = vperm.xlu0 %940, %v32_v2   ;;  %74 = vperm.xlu1 %936, %v32_v2  }
   0x7   :  { %14 = vsyncpa [#allocation4], 0  ;;  %v35_v5 = vld [vmem:[%s1466_s1 + $0x28] sm:$0xff]  ;;  %v37_v6 = vld [vmem:[%s1466_s1 + $0x38] sm:$0xff]  ;;  %s831_s6 = sshll.u32 %s1472_s7, 4  ;;  %s832_s6 = int_to_ptr.hbm [resolvable:$true] %s831_s6 }
   0x8   :  { %v33_v7 = vld [vmem:[%s1466_s1 + $0x18] sm:$0xff]  ;;  %v38_v8 = vld [vmem:[%s1466_s1 + $0x40] sm:$0xff]  ;;  %v44_v9 = vld [vmem:[%s1466_s1 + $0x70] sm:$0xff] }
   0x9   :  { %v41_v10 = vld [vmem:[%s1466_s1 + $0x58] sm:$0xff]  ;;  %v43_v11 = vld [vmem:[%s1466_s1 + $0x68] sm:$0xff]  ;;  %v40_v12 = vld [vmem:[%s1466_s1 + $0x50] sm:$0xff] }
   0xa   :  { %v31_v13 = vld [vmem:[%s1466_s1 + $0x8] sm:$0xff]  ;;  %v30_v14 = vld [vmem:[%s1466_s1] sm:$0xff]  ;;  %v36_v15 = vld [vmem:[%s1466_s1 + $0x30] sm:$0xff] }
   0xb   :  { %v39_v16 = vld [vmem:[%s1466_s1 + $0x48] sm:$0xff]  ;;  %v42_v17 = vld [vmem:[%s1466_s1 + $0x60] sm:$0xff]  ;;  %v45_v18 = vld [vmem:[%s1466_s1 + $0x78] sm:$0xff] }
   0xc   :  { %v61_v19 = vld [vmem:[%s1467_s2 + $0x78] sm:$0xff]  ;;  %v60_v20 = vld [vmem:[%s1467_s2 + $0x70] sm:$0xff]  ;;  %v59_v21 = vld [vmem:[%s1467_s2 + $0x68] sm:$0xff] }
   0xd   :  { %89 = vperm.xlu2 %937, %v35_v5   ;;  %v58_v22 = vld [vmem:[%s1467_s2 + $0x60] sm:$0xff]  ;;  %v52_v24 = vld [vmem:[%s1467_s2 + $0x30] sm:$0xff]  ;;  %v57_v25 = vld [vmem:[%s1467_s2 + $0x58] sm:$0xff] }
   0xe   :  { %188 = vperm.xlu0 %940, %v37_v6   ;;  %79 = vperm.xlu1 %936, %v33_v7   ;;  %v56_v27 = vld [vmem:[%s1467_s2 + $0x50] sm:$0xff]  ;;  %v51_v28 = vld [vmem:[%s1467_s2 + $0x28] sm:$0xff]  ;;  %v54_v31 = vld [vmem:[%s1467_s2 + $0x40] sm:$0xff] }
   0xf   :  { %v55_v29 = vld [vmem:[%s1467_s2 + $0x48] sm:$0xff]  ;;  %v29_v32 = vld [vmem:[%s1465_s0] sm:$0x3]  ;;  %v53_v40 = vld [vmem:[%s1467_s2 + $0x38] sm:$0xff] }
  0x10   :  { %v46_v33 = vld [vmem:[%s1467_s2] sm:$0xff]  ;;  %v1176_v34 = vperm.slane %v29_v32, 0  ;;  %v1178_v35 = vperm.slane %v29_v32, 1  ;;  %v551_v44 = vld [vmem:[%s1469_s4 + $0x8] sm:$0xff]  ;;  %v49_v45 = vld [vmem:[%s1467_s2 + $0x18] sm:$0xff] }
  0x11   :  { %v50_v36 = vld [vmem:[%s1467_s2 + $0x20] sm:$0xff]  ;;  %v48_v49 = vld [vmem:[%s1467_s2 + $0x10] sm:$0xff]  ;;  %v47_v55 = vld [vmem:[%s1467_s2 + $0x8] sm:$0xff] }
  0x12   :  { %v554_v50 = vld [vmem:[%s1469_s4 + $0x20] sm:$0xff]  ;;  %v557_v59 = vld [vmem:[%s1469_s4 + $0x38] sm:$0xff]  ;;  %v552_v63 = vld [vmem:[%s1469_s4 + $0x10] sm:$0xff] }
  0x13   :  { %v550_v51 = vld [vmem:[%s1469_s4] sm:$0xff]  ;;  %v553_v60 = vld [vmem:[%s1469_s4 + $0x18] sm:$0xff] }
  0x15   :  { %104 = vperm.xlu2 %937, %v38_v8  }
  0x16   :  { %216 = vperm.xlu0 %940, %v44_v9   ;;  %99 = vperm.xlu1 %936, %v37_v6  }
  0x1d   :  { %119 = vperm.xlu2 %937, %v41_v10  }
  0x1e   :  { %212 = vperm.xlu0 %940, %v43_v11   ;;  %114 = vperm.xlu1 %936, %v40_v12  }
  0x25   :  { %134 = vperm.xlu2 %937, %v44_v9  }
  0x26   :  { %200 = vperm.xlu0 %940, %v40_v12   ;;  %129 = vperm.xlu1 %936, %v43_v11  }
  0x2d   :  { %939 = vset.pattern.permute.xlu2 %v1030_v3 }
  0x2e   :  { %943 = vset.pattern.permute.xlu0 %v1031_v4  ;;  %938 = vset.pattern.permute.xlu1 %v1030_v3 }
  0x2f   :  { %164 = vperm.xlu2 %939, %v31_v13   ;;  %64 = vperm.xlu0 %943, %v30_v14  }
  0x30   :  { %160 = vperm.xlu1 %938, %v30_v14   ;;  %v559_v14 = vld [vmem:[%s1469_s4 + $0x48] sm:$0xff] }
  0x37   :  { %176 = vperm.xlu2 %939, %v34_v1   ;;  %69 = vperm.xlu0 %943, %v31_v13   ;;  %v706_v13 = vld [vmem:[%s1470_s5] sm:$0xff] }
  0x38   :  { %172 = vperm.xlu1 %938, %v33_v7  }
  0x3f   :  { %184 = vperm.xlu2 %939, %v36_v15   ;;  %94 = vperm.xlu0 %943, %v36_v15   ;;  %v558_v15 = vld [vmem:[%s1469_s4 + $0x40] sm:$0xff] }
  0x40   :  { %180 = vperm.xlu1 %938, %v35_v5   ;;  %v556_v5 = vld [vmem:[%s1469_s4 + $0x30] sm:$0xff] }
  0x47   :  { %196 = vperm.xlu2 %939, %v39_v16   ;;  %109 = vperm.xlu0 %943, %v39_v16  }
  0x48   :  { %192 = vperm.xlu1 %938, %v38_v8   ;;  %v555_v8 = vld [vmem:[%s1469_s4 + $0x28] sm:$0xff] }
  0x4f   :  { %208 = vperm.xlu2 %939, %v42_v17   ;;  %124 = vperm.xlu0 %943, %v42_v17  }
  0x50   :  { %220 = vperm.xlu1 %938, %v45_v18  }
  0x57   :  { %942 = vset.pattern.permute.xlu2 %v1031_v4  ;;  %139 = vperm.xlu0 %943, %v45_v18  }
  0x58   :  { %941 = vset.pattern.permute.xlu1 %v1031_v4  ;;  %333 = vperm.xlu2 %942, %v61_v19  }
  0x59   :  { %328 = vperm.xlu1 %941, %v60_v20  }
  0x5f   :  { %323 = vperm.xlu0 %943, %v59_v21   ;;  %v1144_v23 = vpop.permute.xlu2 %84  ;;  %v709_v21 = vld [vmem:[%s1470_s5 + $0x18] sm:$0xff] }
  0x60   :  { %318 = vperm.xlu2 %942, %v58_v22   ;;  %v147_v1 = vmul.f32 %v1176_v34, %v1144_v23  ;;  %v562_v22 = vld [vmem:[%s1469_s4 + $0x60] sm:$0xff] }
  0x61   :  { %944 = vset.pattern.permute.xlu1 %v1030_v3  ;;  %v560_v3 = vld [vmem:[%s1469_s4 + $0x50] sm:$0xff] }
  0x62   :  { %204 = vperm.xlu1 %944, %v41_v10  }
  0x67   :  { %288 = vperm.xlu0 %943, %v52_v24   ;;  %v1153_v26 = vpop.permute.xlu2 %89  ;;  %v561_v24 = vld [vmem:[%s1469_s4 + $0x58] sm:$0xff] }
  0x68   :  { %313 = vperm.xlu2 %942, %v57_v25  }
  0x6a   :  { %945 = vset.pattern.permute.xlu1 %v1031_v4 }
  0x6b   :  { %308 = vperm.xlu1 %945, %v56_v27  }
  0x6f   :  { %283 = vperm.xlu0 %943, %v51_v28   ;;  %v1165_v30 = vpop.permute.xlu2 %104 }
  0x70   :  { %303 = vperm.xlu2 %942, %v55_v29  }
  0x73   :  { %298 = vperm.xlu1 %945, %v54_v31  }
  0x77   :  { %258 = vperm.xlu0 %943, %v46_v33   ;;  %v1183_v37 = vpop.permute.xlu2 %119 }
  0x78   :  { %v169_v38 = vpop.permute.xlu0 %168  ;;  %v75_v39 = vpop.permute.xlu1 %74  ;;  %278 = vperm.xlu2 %942, %v50_v36   ;;  %v712_v36 = vld [vmem:[%s1470_s5 + $0x30] sm:$0xff] }
  0x79   :  { %v226_v41 = vmul.f32 %v1178_v35, %v169_v38  ;;  %v145_v42 = vmul.f32 %v1176_v34, %v75_v39  ;;  %v708_v39 = vld [vmem:[%s1470_s5 + $0x10] sm:$0xff] }
  0x7b   :  { %293 = vperm.xlu1 %945, %v53_v40   ;;  %v1190_v43 = vadd.f32 %v226_v41, %v145_v42  ;;  %v707_v41 = vld [vmem:[%s1470_s5 + $0x8] sm:$0xff] }
  0x7f   :  { %570 = vperm.xlu0 %943, %v551_v44   ;;  %v1198_v46 = vpop.permute.xlu2 %134 }
  0x80   :  { %v189_v47 = vpop.permute.xlu0 %188  ;;  %v80_v48 = vpop.permute.xlu1 %79  ;;  %273 = vperm.xlu2 %942, %v49_v45  }
  0x81   :  { %v231_v52 = vmul.f32 %v1178_v35, %v189_v47  ;;  %v146_v32 = vmul.f32 %v1176_v34, %v80_v48  ;;  %v715_v47 = vld [vmem:[%s1470_s5 + $0x48] sm:$0xff] }
  0x82   :  { %v711_v48 = vld [vmem:[%s1470_s5 + $0x28] sm:$0xff] }
  0x83   :  { %268 = vperm.xlu1 %945, %v48_v49   ;;  %v710_v49 = vld [vmem:[%s1470_s5 + $0x20] sm:$0xff] }
  0x87   :  { %585 = vperm.xlu0 %943, %v554_v50  }
  0x88   :  { %v1210_v53 = vpop.permute.xlu0 %216  ;;  %v100_v54 = vpop.permute.xlu1 %99  ;;  %565 = vperm.xlu2 %942, %v550_v51  }
  0x89   :  { %v150_v56 = vmul.f32 %v1176_v34, %v100_v54  ;;  %v165_v57 = vpop.permute.xlu2 %164  ;;  %v718_v54 = vld [vmem:[%s1470_s5 + $0x60] sm:$0xff] }
  0x8a   :  { %v225_v28 = vmul.f32 %v1178_v35, %v165_v57 }
  0x8b   :  { %263 = vperm.xlu1 %945, %v47_v55   ;;  %v1216_v58 = vadd.f32 %v231_v52, %v150_v56  ;;  %v714_v55 = vld [vmem:[%s1470_s5 + $0x40] sm:$0xff]  ;;  %v713_v56 = vld [vmem:[%s1470_s5 + $0x38] sm:$0xff] }
  0x8f   :  { %600 = vperm.xlu0 %943, %v557_v59  }
  0x90   :  { %v1224_v61 = vpop.permute.xlu0 %212  ;;  %v115_v62 = vpop.permute.xlu1 %114  ;;  %580 = vperm.xlu2 %942, %v553_v60  }
  0x91   :  { %v177_v0 = vpop.permute.xlu2 %176  ;;  %v153_v9 = vmul.f32 %v1176_v34, %v115_v62 }
  0x92   :  { %v228_v2 = vmul.f32 %v1178_v35, %v177_v0 }
  0x93   :  { %575 = vperm.xlu1 %945, %v552_v63  }
  0x94   :  { %v1235_v4 = vadd.f32 %v228_v2, %v147_v1  ;;  %v717_v1 = vld [vmem:[%s1470_s5 + $0x58] sm:$0xff]  ;;  %v238_v2 = vmul.f32 %v1178_v35, %v1210_v53 }
  0x97   :  { %615 = vperm.xlu0 %943, %v560_v3  }
  0x98   :  { %v201_v6 = vpop.permute.xlu0 %200  ;;  %v1240_v7 = vpop.permute.xlu1 %129  ;;  %595 = vperm.xlu2 %942, %v556_v5   ;;  %v157_v5 = vmul.f32 %v1176_v34, %v1198_v46 }
  0x99   :  { %v234_v10 = vmul.f32 %v1178_v35, %v201_v6  ;;  %v1247_v11 = vpop.permute.xlu2 %184  ;;  %v716_v6 = vld [vmem:[%s1470_s5 + $0x50] sm:$0xff] }
  0x9b   :  { %590 = vperm.xlu1 %945, %v555_v8   ;;  %v1249_v12 = vadd.f32 %v234_v10, %v153_v9 }
  0x9f   :  { %721 = vperm.xlu0 %943, %v706_v13  }
  0xa0   :  { %610 = vperm.xlu2 %942, %v559_v14   ;;  %v254_v14 = vadd.f32 %v238_v2, %v157_v5 }
  0xa1   :  { %v1260_v16 = vpop.permute.xlu2 %196  ;;  %v65_v17 = vpop.permute.xlu0 %64 }
  0xa2   :  { %v143_v18 = vmul.f32 %v1176_v34, %v65_v17  ;;  %v161_v19 = vpop.permute.xlu1 %160  ;;  %v156_v17 = vmul.f32 %v1176_v34, %v1240_v7 }
  0xa3   :  { %v224_v20 = vmul.f32 %v1178_v35, %v161_v19  ;;  %605 = vperm.xlu1 %945, %v558_v15   ;;  %v237_v19 = vmul.f32 %v1178_v35, %v1224_v61  ;;  %v154_v61 = vmul.f32 %v1176_v34, %v1183_v37 }
  0xa5   :  { %v1270_v23 = vadd.f32 %v224_v20, %v143_v18 }
  0xa7   :  { %736 = vperm.xlu0 %943, %v709_v21  }
  0xa8   :  { %625 = vperm.xlu2 %942, %v562_v22  }
  0xa9   :  { %v209_v25 = vpop.permute.xlu2 %208  ;;  %v70_v27 = vpop.permute.xlu0 %69 }
  0xaa   :  { %v144_v29 = vmul.f32 %v1176_v34, %v70_v27  ;;  %v173_v31 = vpop.permute.xlu1 %172  ;;  %v236_v59 = vmul.f32 %v1178_v35, %v209_v25  ;;  %v253_v27 = vadd.f32 %v237_v19, %v156_v17 }
  0xab   :  { %v227_v33 = vmul.f32 %v1178_v35, %v173_v31  ;;  %620 = vperm.xlu1 %945, %v561_v24  }
  0xac   :  { %v1282_v38 = vadd.f32 %v225_v28, %v144_v29  ;;  %v815_v28 = vld [vmem:[#allocation2] sm:$0x1] }
  0xad   :  { %v1287_v40 = vadd.f32 %v227_v33, %v146_v32 }
  0xaf   :  { %751 = vperm.xlu0 %943, %v712_v36  }
  0xb0   :  { %731 = vperm.xlu2 %942, %v708_v39  }
  0xb1   :  { %v1292_v42 = vpop.permute.xlu0 %94 }
  0xb2   :  { %v1294_v44 = vpop.permute.xlu1 %180  ;;  %v334_v45 = vpop.permute.xlu2 %333 }
  0xb3   :  { %726 = vperm.xlu1 %945, %v707_v41  }
  0xb7   :  { %766 = vperm.xlu0 %943, %v715_v47   ;;  %v233_v47 = vmul.f32 %v1178_v35, %v1260_v16 }
  0xb8   :  { %746 = vperm.xlu2 %942, %v711_v48  }
  0xb9   :  { %v110_v50 = vpop.permute.xlu0 %109 }
  0xba   :  { %v1305_v51 = vpop.permute.xlu1 %192  ;;  %v319_v52 = vpop.permute.xlu2 %318  ;;  %v152_v39 = vmul.f32 %v1176_v34, %v110_v50 }
  0xbb   :  { %741 = vperm.xlu1 %945, %v710_v49   ;;  %v232_v17 = vmul.f32 %v1178_v35, %v1305_v51 }
  0xbf   :  { %781 = vperm.xlu0 %943, %v718_v54  }
  0xc0   :  { %761 = vperm.xlu2 %942, %v714_v55   ;;  %v249_v55 = vadd.f32 %v233_v47, %v152_v39 }
  0xc1   :  { %v125_v57 = vpop.permute.xlu0 %124 }
  0xc2   :  { %v155_v60 = vmul.f32 %v1176_v34, %v125_v57  ;;  %v221_v62 = vpop.permute.xlu1 %220  ;;  %v314_v63 = vpop.permute.xlu2 %313 }
  0xc3   :  { %756 = vperm.xlu1 %945, %v713_v56   ;;  %v239_v9 = vmul.f32 %v1178_v35, %v221_v62 }
  0xc4   :  { %v252_v0 = vadd.f32 %v236_v59, %v155_v60 }
  0xc6   :  { %v1323_v3 = vadd.f32 %v319_v52, %v252_v0 }
  0xc8   :  { %776 = vperm.xlu2 %942, %v717_v1   ;;  %v364_v15 = vmin.f32 %v1323_v3, 0.0 }
  0xc9   :  { %v140_v8 = vpop.permute.xlu0 %139 }
  0xca   :  { %v158_v10 = vmul.f32 %v1176_v34, %v140_v8  ;;  %v304_v13 = vpop.permute.xlu2 %303  ;;  %v392_v22 = vmul.f32 1.442695, %v364_v15 }
  0xcb   :  { %771 = vperm.xlu1 %945, %v716_v6   ;;  %v329_v53 = vpop.permute.xlu1 %328  ;;  %v1348_v50 = vadd.f32 %v304_v13, %v249_v55 }
  0xcc   :  { %v255_v46 = vadd.f32 %v239_v9, %v158_v10  ;;  %v350_v18 = vadd.f32 %v329_v53, %v254_v14  ;;  %v230_v9 = vmul.f32 %v1178_v35, %v1247_v11  ;;  %v149_v10 = vmul.f32 %v1176_v34, %v1292_v42 }
  0xcd   :  { %v361_v14 = vmin.f32 %v1348_v50, 0.0 }
  0xce   :  { %v351_v20 = vadd.f32 %v334_v45, %v255_v46  ;;  %v366_v21 = vmin.f32 %v350_v18, 0.0  ;;  %v246_v42 = vadd.f32 %v230_v9, %v149_v10 }
  0xd0   :  { %v367_v24 = vmin.f32 %v351_v20, 0.0  ;;  %v396_v25 = vmul.f32 1.442695, %v366_v21 }
  0xd1   :  { %v324_v29 = vpop.permute.xlu0 %323 }
  0xd2   :  { %v398_v31 = vmul.f32 1.442695, %v367_v24  ;;  %946 = vpow2.f32 %v396_v25  ;;  %v349_v32 = vadd.f32 %v324_v29, %v253_v27  ;;  %v279_v33 = vpop.permute.xlu2 %278 }
  0xd3   :  { %948 = vpow2.f32 %v392_v22  ;;  %818 = vperm.xlu1 %945, %v815_v28   ;;  %v1344_v48 = vadd.f32 %v279_v33, %v1235_v4  ;;  %v229_v4 = vmul.f32 %v1178_v35, %v1294_v44  ;;  %v386_v22 = vmul.f32 1.442695, %v361_v14 }
  0xd4   :  { %950 = vpow2.f32 %v398_v31  ;;  %v365_v7 = vmin.f32 %v349_v32, 0.0  ;;  %v205_v36 = vpop.permute.xlu1 %204 }
  0xd5   :  { %v235_v41 = vmul.f32 %v1178_v35, %v205_v36  ;;  %v356_v62 = vmin.f32 %v1344_v48, 0.0 }
  0xd6   :  { %v394_v45 = vmul.f32 1.442695, %v365_v7 }
  0xd7   :  { %v251_v49 = vadd.f32 %v235_v41, %v154_v61  ;;  %v376_v53 = vmul.f32 1.442695, %v356_v62 }
  0xd8   :  { %v947_v52 = vpop.eup %946  ;;  %952 = vpow2.f32 %v394_v45 }
  0xd9   :  { %v949_v54 = vpop.eup %948  ;;  %v854_v56 = vadd.f32 -1.0, %v947_v52  ;;  %v1346_v57 = vadd.f32 %v314_v63, %v251_v49  ;;  %v289_v37 = vpop.permute.xlu0 %288  ;;  %v148_v63 = vmul.f32 %v1176_v34, %v1153_v26 }
  0xda   :  { %v951_v59 = vpop.eup %950  ;;  %v852_v2 = vadd.f32 -1.0, %v949_v54  ;;  %v1367_v35 = vadd.f32 %v289_v37, %v246_v42 }
  0xdb   :  { %v855_v60 = vadd.f32 -1.0, %v951_v59  ;;  %v363_v16 = vmin.f32 %v1346_v57, 0.0  ;;  %v430_v0 = vmax.f32 %v350_v18, %v854_v56  ;;  %v245_v18 = vadd.f32 %v229_v4, %v148_v63 }
  0xdc   :  { %v428_v26 = vmax.f32 %v1323_v3, %v852_v2 }
  0xdd   :  { %v431_v1 = vmax.f32 %v351_v20, %v855_v60  ;;  %v390_v5 = vmul.f32 1.442695, %v363_v16  ;;  %v309_v6 = vpop.permute.xlu1 %308 }
  0xde   :  { %v953_v8 = vpop.eup %952  ;;  %v346_v13 = vadd.f32 %v309_v6, %v1249_v12  ;;  %v151_v12 = vmul.f32 %v1176_v34, %v1165_v30  ;;  %v358_v30 = vmin.f32 %v1367_v35, 0.0 }
  0xdf   :  { %v455_v44 = vpack.c.bf16 %v431_v1, %v430_v0  ;;  %v853_v15 = vadd.f32 -1.0, %v953_v8  ;;  %954 = vpow2.f32 %v390_v5 }
  0xe0   :  { %v362_v46 = vmin.f32 %v346_v13, 0.0  ;;  %956 = vpow2.f32 %v376_v53  ;;  %v248_v3 = vadd.f32 %v232_v17, %v151_v12  ;;  %v380_v39 = vmul.f32 1.442695, %v358_v30 }
  0xe1   :  { %v429_v19 = vmax.f32 %v349_v32, %v853_v15  ;;  %v284_v11 = vpop.permute.xlu0 %283  ;;  %504 = vmatpush.bf16.msra.mxu0 %v455_v44  ;;  %909 = vmatpush.bf16.msra.mxu1 %v455_v44  ;;  %v274_v32 = vpop.permute.xlu2 %273 }
  0xe2   :  { %v388_v20 = vmul.f32 1.442695, %v362_v46  ;;  %v341_v21 = vadd.f32 %v284_v11, %v245_v18  ;;  %910 = vmatpush.bf16.msra.mxu2 %v455_v44  ;;  %911 = vmatpush.bf16.msra.mxu3 %v455_v44  ;;  %v1371_v41 = vadd.f32 %v274_v32, %v1287_v40  ;;  %v905_v32 = vld [vmem:[%s1468_s3 + $0x20] sm:$0xff] }
  0xe3   :  { %v454_v24 = vpack.c.bf16 %v429_v19, %v428_v26 }
  0xe4   :  { %958 = vpow2.f32 %v388_v20  ;;  %v357_v51 = vmin.f32 %v341_v21, 0.0  ;;  %v355_v60 = vmin.f32 %v1371_v41, 0.0 }
  0xe5   :  { %v299_v25 = vpop.permute.xlu1 %298  ;;  %505 = vmatpush.bf16.msra.mxu0 %v454_v24  ;;  %912 = vmatpush.bf16.msra.mxu1 %v454_v24  ;;  %v955_v27 = vpop.eup %954  ;;  %960 = vpow2.f32 %v386_v22 }
  0xe6   :  { %v378_v28 = vmul.f32 1.442695, %v357_v51  ;;  %v344_v29 = vadd.f32 %v299_v25, %v248_v3  ;;  %913 = vmatpush.bf16.msra.mxu2 %v454_v24  ;;  %914 = vmatpush.bf16.msra.mxu3 %v454_v24  ;;  %v957_v31 = vpop.eup %956  ;;  %v851_v7 = vadd.f32 -1.0, %v955_v27 }
  0xe7   :  { %v844_v47 = vadd.f32 -1.0, %v957_v31  ;;  %v903_v31 = vld [vmem:[%s1468_s3 + $0x10] sm:$0xff] }
  0xe8   :  { %962 = vpow2.f32 %v378_v28  ;;  %v360_v34 = vmin.f32 %v344_v29, 0.0  ;;  %v427_v52 = vmax.f32 %v1346_v57, %v851_v7  ;;  %v907_v7 = vld [vmem:[%s1468_s3 + $0x30] sm:$0xff] }
  0xe9   :  { %v420_v40 = vmax.f32 %v1344_v48, %v844_v47  ;;  %v259_v0 = vpop.permute.xlu0 %258 }
  0xea   :  { %v959_v33 = vpop.eup %958  ;;  %v384_v36 = vmul.f32 1.442695, %v360_v34  ;;  %v336_v6 = vadd.f32 %v259_v0, %v1270_v23  ;;  %v901_v34 = vld [vmem:[%s1468_s3] sm:$0xff] }
  0xeb   :  { %v850_v61 = vadd.f32 -1.0, %v959_v33  ;;  %v961_v45 = vpop.eup %960  ;;  %v902_v33 = vld [vmem:[%s1468_s3 + $0x8] sm:$0xff] }
  0xec   :  { %964 = vpow2.f32 %v384_v36  ;;  %v849_v16 = vadd.f32 -1.0, %v961_v45  ;;  %v352_v14 = vmin.f32 %v336_v6, 0.0  ;;  %v904_v36 = vld [vmem:[%s1468_s3 + $0x18] sm:$0xff] }
  0xed   :  { %v426_v49 = vmax.f32 %v346_v13, %v850_v61  ;;  %v294_v54 = vpop.permute.xlu1 %293  ;;  %966 = vpow2.f32 %v380_v39  ;;  %v906_v61 = vld [vmem:[%s1468_s3 + $0x28] sm:$0xff]  ;;  %v908_v39 = vld [vmem:[%s1468_s3 + $0x38] sm:$0xff]  ;;  %s1032_s3 = smov [#allocation3]  }
  0xee   :  { %v963_v55 = vpop.eup %962  ;;  %v343_v56 = vadd.f32 %v294_v54, %v1216_v58  ;;  %v374_v58 = vmul.f32 1.442695, %v355_v60  ;;  %v425_v8 = vmax.f32 %v1348_v50, %v849_v16  ;;  %v368_v46 = vmul.f32 1.442695, %v352_v14  ;;  %s829_s27 = sshll.u32 %s1032_s3, 4  ;;  %s830_s27 = int_to_ptr.vmem [resolvable:$true] %s829_s27 }
  0xef   :  { %v453_v37 = vpack.c.bf16 %v427_v52, %v426_v49  ;;  %v845_v59 = vadd.f32 -1.0, %v963_v55 }
  0xf0   :  { %v359_v62 = vmin.f32 %v343_v56, 0.0 }
  0xf1   :  { %v421_v4 = vmax.f32 %v341_v21, %v845_v59  ;;  %506 = vmatpush.bf16.msra.mxu0 %v453_v37  ;;  %915 = vmatpush.bf16.msra.mxu1 %v453_v37  ;;  %v571_v45 = vpop.permute.xlu0 %570 }
  0xf2   :  { %v965_v1 = vpop.eup %964  ;;  %v382_v2 = vmul.f32 1.442695, %v359_v62  ;;  %916 = vmatpush.bf16.msra.mxu2 %v453_v37  ;;  %917 = vmatpush.bf16.msra.mxu3 %v453_v37 }
  0xf3   :  { %v450_v57 = vpack.c.bf16 %v421_v4, %v420_v40  ;;  %v848_v5 = vadd.f32 -1.0, %v965_v1  ;;  %v967_v10 = vpop.eup %966 }
  0xf4   :  { %968 = vpow2.f32 %v382_v2  ;;  %v846_v15 = vadd.f32 -1.0, %v967_v10 }
  0xf5   :  { %v424_v63 = vmax.f32 %v344_v29, %v848_v5  ;;  %v269_v9 = vpop.permute.xlu1 %268  ;;  %970 = vpow2.f32 %v374_v58 }
  0xf6   :  { %v338_v48 = vadd.f32 %v269_v9, %v1190_v43  ;;  %v422_v50 = vmax.f32 %v1367_v35, %v846_v15 }
  0xf7   :  { %v452_v13 = vpack.c.bf16 %v425_v8, %v424_v63 }
  0xf8   :  { %v354_v44 = vmin.f32 %v338_v48, 0.0 }
  0xf9   :  { %507 = vmatpush.bf16.msra.mxu0 %v452_v13  ;;  %918 = vmatpush.bf16.msra.mxu1 %v452_v13  ;;  %v586_v52 = vpop.permute.xlu0 %585 }
  0xfa   :  { %v969_v53 = vpop.eup %968  ;;  %v372_v17 = vmul.f32 1.442695, %v354_v44  ;;  %919 = vmatpush.bf16.msra.mxu2 %v452_v13  ;;  %920 = vmatpush.bf16.msra.mxu3 %v452_v13 }
  0xfb   :  { %v847_v23 = vadd.f32 -1.0, %v969_v53  ;;  %v971_v19 = vpop.eup %970 }
  0xfc   :  { %972 = vpow2.f32 %v372_v17  ;;  %v843_v42 = vadd.f32 -1.0, %v971_v19 }
  0xfd   :  { %v423_v18 = vmax.f32 %v343_v56, %v847_v23  ;;  %v264_v26 = vpop.permute.xlu1 %263  ;;  %974 = vpow2.f32 %v368_v46 }
  0xfe   :  { %v337_v43 = vadd.f32 %v264_v26, %v1282_v38  ;;  %v419_v24 = vmax.f32 %v1371_v41, %v843_v42  ;;  %v566_v41 = vpop.permute.xlu2 %565 }
  0xff   :  { %v451_v11 = vpack.c.bf16 %v423_v18, %v422_v50 }
 0x100   :  { %v353_v12 = vmin.f32 %v337_v43, 0.0 }
 0x101   :  { %508 = vmatpush.bf16.msra.mxu0 %v451_v11  ;;  %921 = vmatpush.bf16.msra.mxu1 %v451_v11  ;;  %v601_v56 = vpop.permute.xlu0 %600 }
 0x102   :  { %v973_v20 = vpop.eup %972  ;;  %v370_v21 = vmul.f32 1.442695, %v353_v12  ;;  %922 = vmatpush.bf16.msra.mxu2 %v451_v11  ;;  %923 = vmatpush.bf16.msra.mxu3 %v451_v11 }
 0x103   :  { %v842_v22 = vadd.f32 -1.0, %v973_v20  ;;  %v975_v51 = vpop.eup %974 }
 0x104   :  { %976 = vpow2.f32 %v370_v21  ;;  %v840_v3 = vadd.f32 -1.0, %v975_v51 }
 0x105   :  { %v418_v35 = vmax.f32 %v338_v48, %v842_v22  ;;  %509 = vmatpush.bf16.msra.mxu0 %v450_v57  ;;  %924 = vmatpush.bf16.msra.mxu1 %v450_v57  ;;  %v576_v47 = vpop.permute.xlu1 %575 }
 0x106   :  { %925 = vmatpush.bf16.msra.mxu2 %v450_v57  ;;  %926 = vmatpush.bf16.msra.mxu3 %v450_v57  ;;  %v416_v28 = vmax.f32 %v336_v6, %v840_v3  ;;  %v581_v49 = vpop.permute.xlu2 %580 }
 0x107   :  { %v449_v38 = vpack.c.bf16 %v419_v24, %v418_v35 }
 0x109   :  { %510 = vmatpush.bf16.msra.mxu0 %v449_v38  ;;  %927 = vmatpush.bf16.msra.mxu1 %v449_v38  ;;  %v616_v1 = vpop.permute.xlu0 %615 }
 0x10a   :  { %v977_v25 = vpop.eup %976  ;;  %928 = vmatpush.bf16.msra.mxu2 %v449_v38  ;;  %929 = vmatpush.bf16.msra.mxu3 %v449_v38 }
 0x10b   :  { %v841_v27 = vadd.f32 -1.0, %v977_v25 }
 0x10d   :  { %v417_v29 = vmax.f32 %v337_v43, %v841_v27  ;;  %v591_v54 = vpop.permute.xlu1 %590 }
 0x10e   :  { %v596_v55 = vpop.permute.xlu2 %595 }
 0x10f   :  { %v448_v30 = vpack.c.bf16 %v417_v29, %v416_v28 }
 0x111   :  { %511 = vmatpush.bf16.msra.mxu0 %v448_v30  ;;  %930 = vmatpush.bf16.msra.mxu1 %v448_v30  ;;  %v1422_v46 = vpop.permute.xlu0 %721 }
 0x112   :  { %931 = vmatpush.bf16.msra.mxu2 %v448_v30  ;;  %932 = vmatpush.bf16.msra.mxu3 %v448_v30 }
 0x114   :  { %512 = vmatmul.bf16.vlgmr.msra.gmra.mxu0 %v901_v34  ;;  %522 = vmatmul.bf16.vlgmr.msra.gmra.mxu1 %v903_v31 }
 0x115   :  { %532 = vmatmul.bf16.vlgmr.msra.gmra.mxu2 %v905_v32  ;;  %542 = vmatmul.bf16.vlgmr.msra.gmra.mxu3 %v907_v7  ;;  %v606_v60 = vpop.permute.xlu1 %605 }
 0x116   :  { %v611_v62 = vpop.permute.xlu2 %610 }
 0x11d   :  { %v621_v6 = vpop.permute.xlu1 %620 }
 0x11e   :  { %v626_v14 = vpop.permute.xlu2 %625 }
 0x124   :  { %517 = vmatmul.bf16.gmra.mxu0 %v902_v33  ;;  %527 = vmatmul.bf16.gmra.mxu1 %v904_v36  ;;  %v737_v33 = vpop.permute.xlu0 %736 }
 0x125   :  { %537 = vmatmul.bf16.gmra.mxu2 %v906_v61  ;;  %546 = vmatmul.bf16.gmra.mxu3 %v908_v39  ;;  %v727_v22 = vpop.permute.xlu1 %726 }
 0x126   :  { %v732_v28 = vpop.permute.xlu2 %731 }
 0x191   :  { %v513_v37 = vpop.f32.mrf.mxu0  ;;  %v523_v59 = vpop.f32.mrf.mxu1 }
 0x192   :  { %v1407_v2 = vadd.f32 %v566_v41, %v513_v37  ;;  %v1413_v8 = vadd.f32 %v586_v52, %v523_v59 }
 0x194   :  { %v641_v58 = vmin.f32 %v1407_v2, 0.0  ;;  %v645_v17 = vmin.f32 %v1413_v8, 0.0 }
 0x196   :  { %v654_v44 = vmul.f32 1.442695, %v641_v58  ;;  %v662_v19 = vmul.f32 1.442695, %v645_v17 }
 0x198   :  { %v533_v16 = vpop.f32.mrf.mxu2  ;;  %v543_v40 = vpop.f32.mrf.mxu3 }
 0x199   :  { %v515_v4 = vpop.f32.mrf.mxu0  ;;  %v525_v0 = vpop.f32.mrf.mxu1  ;;  %v1427_v11 = vadd.f32 %v606_v60, %v533_v16 }
 0x19a   :  { %v1409_v57 = vadd.f32 %v571_v45, %v515_v4  ;;  %v1415_v15 = vadd.f32 %v591_v54, %v525_v0  ;;  %v742_v0 = vpop.permute.xlu1 %741 }
 0x19b   :  { %v649_v29 = vmin.f32 %v1427_v11, 0.0 }
 0x19c   :  { %v642_v5 = vmin.f32 %v1409_v57, 0.0  ;;  %v646_v18 = vmin.f32 %v1415_v15, 0.0 }
 0x19e   :  { %v656_v63 = vmul.f32 1.442695, %v642_v5  ;;  %v664_v24 = vmul.f32 1.442695, %v646_v18 }
 0x1a0   :  { %v535_v9 = vpop.f32.mrf.mxu2  ;;  %v545_v10 = vpop.f32.mrf.mxu3  ;;  %978 = vpow2.f32 %v656_v63 }
 0x1a1   :  { %v518_v48 = vpop.f32.mrf.mxu0  ;;  %v528_v13 = vpop.f32.mrf.mxu1  ;;  %980 = vpow2.f32 %v654_v44  ;;  %v1429_v35 = vadd.f32 %v611_v62, %v535_v9 }
 0x1a2   :  { %v1417_v53 = vadd.f32 %v576_v47, %v518_v48  ;;  %v1420_v23 = vadd.f32 %v596_v55, %v528_v13  ;;  %v670_v47 = vmul.f32 1.442695, %v649_v29  ;;  %v747_v9 = vpop.permute.xlu2 %746 }
 0x1a3   :  { %v650_v36 = vmin.f32 %v1429_v35, 0.0 }
 0x1a4   :  { %v643_v50 = vmin.f32 %v1417_v53, 0.0  ;;  %v647_v43 = vmin.f32 %v1420_v23, 0.0 }
 0x1a5   :  { %v672_v59 = vmul.f32 1.442695, %v650_v36 }
 0x1a6   :  { %v658_v26 = vmul.f32 1.442695, %v643_v50  ;;  %v979_v21 = vpop.eup %978  ;;  %v666_v3 = vmul.f32 1.442695, %v647_v43 }
 0x1a7   :  { %v981_v27 = vpop.eup %980  ;;  %v889_v32 = vadd.f32 -1.0, %v979_v21 }
 0x1a8   :  { %982 = vpow2.f32 %v658_v26  ;;  %v538_v12 = vpop.f32.mrf.mxu2  ;;  %v547_v25 = vpop.f32.mrf.mxu3  ;;  %v888_v41 = vadd.f32 -1.0, %v981_v27 }
 0x1a9   :  { %v520_v42 = vpop.f32.mrf.mxu0  ;;  %v530_v20 = vpop.f32.mrf.mxu1  ;;  %984 = vpow2.f32 %v662_v19  ;;  %v1436_v30 = vadd.f32 %v616_v1, %v538_v12 }
 0x1aa   :  { %v1431_v51 = vadd.f32 %v581_v49, %v520_v42  ;;  %v1433_v38 = vadd.f32 %v601_v56, %v530_v20  ;;  %986 = vpow2.f32 %v664_v24  ;;  %v1441_v49 = vadd.f32 %v626_v14, %v543_v40 }
 0x1ab   :  { %988 = vpow2.f32 %v666_v3  ;;  %v651_v52 = vmin.f32 %v1436_v30, 0.0  ;;  %v694_v56 = vmax.f32 %v1409_v57, %v889_v32  ;;  %v693_v60 = vmax.f32 %v1407_v2, %v888_v41  ;;  %v762_v32 = vpop.permute.xlu2 %761 }
 0x1ac   :  { %v644_v34 = vmin.f32 %v1431_v51, 0.0  ;;  %v648_v31 = vmin.f32 %v1433_v38, 0.0  ;;  %v653_v1 = vmin.f32 %v1441_v49, 0.0 }
 0x1ad   :  { %v674_v5 = vmul.f32 1.442695, %v651_v52  ;;  %v785_v57 = vmul.f32 %v727_v22, %v694_v56  ;;  %v784_v2 = vmul.f32 %v1422_v46, %v693_v60 }
 0x1ae   :  { %v983_v7 = vpop.eup %982  ;;  %v660_v61 = vmul.f32 1.442695, %v644_v34  ;;  %v668_v39 = vmul.f32 1.442695, %v648_v31  ;;  %v678_v17 = vmul.f32 1.442695, %v653_v1 }
 0x1af   :  { %v890_v45 = vadd.f32 -1.0, %v983_v7  ;;  %v985_v55 = vpop.eup %984  ;;  %v797_v18 = vadd.f32 %v785_v57, %v784_v2 }
 0x1b0   :  { %990 = vpow2.f32 %v660_v61  ;;  %v540_v54 = vpop.f32.mrf.mxu2  ;;  %v548_v4 = vpop.f32.mrf.mxu3  ;;  %v892_v63 = vadd.f32 -1.0, %v985_v55 }
 0x1b1   :  { %v1445_v37 = vadd.f32 %v621_v6, %v540_v54  ;;  %992 = vpow2.f32 %v668_v39  ;;  %v695_v62 = vmax.f32 %v1417_v53, %v890_v45  ;;  %v987_v40 = vpop.eup %986  ;;  %v752_v53 = vpop.permute.xlu0 %751 }
 0x1b2   :  { %994 = vpow2.f32 %v670_v47  ;;  %v989_v58 = vpop.eup %988  ;;  %v893_v48 = vadd.f32 -1.0, %v987_v40  ;;  %v697_v50 = vmax.f32 %v1413_v8, %v892_v63  ;;  %v757_v8 = vpop.permute.xlu1 %756 }
 0x1b3   :  { %v652_v16 = vmin.f32 %v1445_v37, 0.0  ;;  %996 = vpow2.f32 %v672_v59  ;;  %v786_v13 = vmul.f32 %v732_v28, %v695_v62  ;;  %v894_v26 = vadd.f32 -1.0, %v989_v58  ;;  %v777_v40 = vpop.permute.xlu2 %776 }
 0x1b4   :  { %998 = vpow2.f32 %v674_v5  ;;  %v698_v12 = vmax.f32 %v1415_v15, %v893_v48  ;;  %v788_v22 = vmul.f32 %v742_v0, %v697_v50 }
 0x1b5   :  { %v676_v10 = vmul.f32 1.442695, %v652_v16  ;;  %v798_v42 = vadd.f32 %v797_v18, %v786_v13  ;;  %v699_v3 = vmax.f32 %v1420_v23, %v894_v26 }
 0x1b6   :  { %v991_v6 = vpop.eup %990  ;;  %v789_v28 = vmul.f32 %v747_v9, %v698_v12 }
 0x1b7   :  { %v891_v14 = vadd.f32 -1.0, %v991_v6  ;;  %v993_v44 = vpop.eup %992  ;;  %1000 = vpow2.f32 %v676_v10  ;;  %v790_v7 = vmul.f32 %v752_v53, %v699_v3 }
 0x1b8   :  { %v995_v43 = vpop.eup %994  ;;  %v895_v46 = vadd.f32 -1.0, %v993_v44  ;;  %1002 = vpow2.f32 %v678_v17 }
 0x1b9   :  { %v696_v19 = vmax.f32 %v1431_v51, %v891_v14  ;;  %v997_v21 = vpop.eup %996  ;;  %v896_v24 = vadd.f32 -1.0, %v995_v43  ;;  %v767_v39 = vpop.permute.xlu0 %766 }
 0x1ba   :  { %v999_v27 = vpop.eup %998  ;;  %v897_v29 = vadd.f32 -1.0, %v997_v21  ;;  %v700_v51 = vmax.f32 %v1433_v38, %v895_v46 }
 0x1bb   :  { %v787_v20 = vmul.f32 %v737_v33, %v696_v19  ;;  %v701_v15 = vmax.f32 %v1427_v11, %v896_v24  ;;  %v898_v33 = vadd.f32 -1.0, %v999_v27  ;;  %v772_v11 = vpop.permute.xlu1 %771 }
 0x1bc   :  { %v702_v41 = vmax.f32 %v1429_v35, %v897_v29  ;;  %v791_v23 = vmul.f32 %v757_v8, %v700_v51 }
 0x1bd   :  { %v799_v25 = vadd.f32 %v798_v42, %v787_v20  ;;  %v1001_v31 = vpop.eup %1000  ;;  %v792_v52 = vmul.f32 %v762_v32, %v701_v15  ;;  %v703_v55 = vmax.f32 %v1436_v30, %v898_v33 }
 0x1be   :  { %v1003_v61 = vpop.eup %1002  ;;  %v899_v47 = vadd.f32 -1.0, %v1001_v31  ;;  %v793_v38 = vmul.f32 %v767_v39, %v702_v41 }
 0x1bf   :  { %v800_v34 = vadd.f32 %v799_v25, %v788_v22  ;;  %v900_v54 = vadd.f32 -1.0, %v1003_v61  ;;  %v794_v16 = vmul.f32 %v772_v11, %v703_v55 }
 0x1c0   :  { %v704_v60 = vmax.f32 %v1445_v37, %v899_v47 }
 0x1c1   :  { %v801_v36 = vadd.f32 %v800_v34, %v789_v28  ;;  %v705_v62 = vmax.f32 %v1441_v49, %v900_v54  ;;  %v782_v1 = vpop.permute.xlu0 %781 }
 0x1c2   :  { %v795_v0 = vmul.f32 %v777_v40, %v704_v60 }
 0x1c3   :  { %v802_v45 = vadd.f32 %v801_v36, %v790_v7  ;;  %v796_v5 = vmul.f32 %v782_v1, %v705_v62  ;;  %v819_v10 = vpop.permute.xlu1 %818 }
 0x1c4   :  { %v821_v49 = vperm.slane %v819_v10, 0 }
 0x1c5   :  { %v803_v56 = vadd.f32 %v802_v45, %v791_v23 }
 0x1c7   :  { %v804_v59 = vadd.f32 %v803_v56, %v792_v52 }
 0x1c9   :  { %v805_v4 = vadd.f32 %v804_v59, %v793_v38 }
 0x1cb   :  { %v806_v35 = vadd.f32 %v805_v4, %v794_v16 }
 0x1cd   :  { %v807_v58 = vadd.f32 %v806_v35, %v795_v0 }
 0x1cf   :  { %v808_v63 = vadd.f32 %v807_v58, %v796_v5 }
 0x1d1   :  { %v809_v57 = vrot.slane %v808_v63, 4 }
 0x1d3   :  { %v810_v6 = vadd.f32 %v809_v57, %v808_v63 }
 0x1d5   :  { %v811_v30 = vrot.slane %v810_v6, 2 }
 0x1d7   :  { %v812_v9 = vadd.f32 %v811_v30, %v810_v6 }
 0x1d9   :  { %v813_v2 = vrot.slane %v812_v9, 1 }
 0x1db   :  { %v814_v37 = vadd.f32 %v813_v2, %v812_v9 }
 0x1dd   :  { %v822_v48 = vadd.f32 %v821_v49, %v814_v37 }
 0x1df   :  { %823 = vst [vmem:[#allocation3] sm:$0x1] %v822_v48 }
 0x1e0   :  { %834 = dma.vmem_to_hbm [thread:$0]  %s830_s27, 16, %s832_s6, [#allocation4]  }
 0x1e1   :  { %1028 = dma.done.wait [#allocation4], 16  }
 0x1e2   :  { %1029 = vsyncadd [#allocation4], 4294967280 }
 0x1e3   :  { %839 = vsyncpa [#allocation4], 1 }

</bundles_post_ra>
